<compile_context>
chip_gen: v6e
topology: v6e:2x2x1
jax: 0.10.0
libtpu: 0.0.40
codegen_flags: <defaults>
</compile_context>

<pallas_src>
import functools
import math

import jax
import jax.numpy as jnp
from jax import lax
from jax.experimental import pallas as pl
from jax.experimental.pallas import tpu as pltpu

LANES = 128
_VMEM_LIMIT = 32 * 1024 * 1024  # <= scoped/physical VMEM on v5e, v6e and v7x


def _round_up(x, m):
    return -(-int(x) // int(m)) * int(m)


def _detect_num_cores():
    """Best-effort TensorCore count (v7x megacore); defaults to 1 (v5e/v6e)."""
    try:
        info = pltpu.get_tpu_info()
        for name in ("num_cores", "core_count", "num_tensorcores",
                     "cores_per_chip"):
            val = getattr(info, name, None)
            if isinstance(val, int) and val > 0:
                return val
    except Exception:
        pass
    return 1


def _tiling(batch, block_batch, num_cores):
    """Lane-dense batch tiling: TB lanes per step, optional 2-way core split."""
    tb = max(LANES, min(_round_up(block_batch, LANES), _round_up(batch, LANES)))
    steps_total = -(-_round_up(batch, LANES) // tb)
    # Only split across cores when there are >=2 cores AND each split keeps
    # >=2 steps (so DMA still pipelines); padding is then bounded by one tile.
    nsplit = 2 if (num_cores >= 2 and steps_total >= 4) else 1
    sps = -(-steps_total // nsplit)
    total = nsplit * sps * tb
    return tb, nsplit, sps, total


def _accumulate_loss_tile(u, p, n, valid_f, acc_base, acc_reg):
    """u/p/n: (Dp, TB) f32 tiles (D on sublanes, batch on lanes).
    valid_f: (1, TB) f32 mask of real (non-padded) batch lanes.
    Adds this tile's softplus / L2 sums into the (1, 1) scalar accumulators."""
    diff = u * (p - n)                                  # VPU
    x = jnp.sum(diff, axis=0, keepdims=True)            # (1, TB) lane-dense logits (XLU)
    # -logsigmoid(x) == softplus(-x), numerically stable form (EUP slot).
    sp = jnp.maximum(-x, 0.0) + jnp.log1p(jnp.exp(-jnp.abs(x)))
    sq = u * u + p * p + n * n                           # fused L2 chain
    acc_base[...] += jnp.sum(sp * valid_f)               # in-register tree reduce
    acc_reg[...] += jnp.sum(sq * valid_f)                # mask broadcasts over sublanes


def _bprmf_fused_kernel(wu_ref, wi_ref, uid_ref, pid_ref, nid_ref,
                        base_ref, reg_ref, acc_base, acc_reg,
                        *, batch, block_batch, steps_per_split,
                        n_users_p, n_items_p):
    c = pl.program_id(0)
    i = pl.program_id(1)

    @pl.when(i == 0)
    def _init():
        acc_base[...] = jnp.zeros_like(acc_base)
        acc_reg[...] = jnp.zeros_like(acc_reg)

    def gather(table_ref, idx, n_rows):
        # One-hot gather on the (otherwise idle) MXU; exact for f32 tables.
        rid = lax.broadcasted_iota(jnp.int32, (n_rows, block_batch), 0)
        onehot = (rid == idx).astype(jnp.float32)        # (N, TB)
        return jnp.dot(table_ref[...], onehot,
                       preferred_element_type=jnp.float32)   # (Dp, TB)

    u = gather(wu_ref, uid_ref[...], n_users_p)
    p = gather(wi_ref, pid_ref[...], n_items_p)
    n = gather(wi_ref, nid_ref[...], n_items_p)

    start = (c * steps_per_split + i) * block_batch
    lane = lax.broadcasted_iota(jnp.int32, (1, block_batch), 1)
    valid_f = ((start + lane) < batch).astype(jnp.float32)

    _accumulate_loss_tile(u, p, n, valid_f, acc_base, acc_reg)

    @pl.when(i == pl.num_programs(1) - 1)
    def _finalize():
        base_ref[...] = acc_base[...].reshape(1, 1, 1)
        reg_ref[...] = acc_reg[...].reshape(1, 1, 1)


def _bprmf_rows_kernel(u_ref, p_ref, n_ref, base_ref, reg_ref,
                       acc_base, acc_reg,
                       *, batch, block_batch, steps_per_split):
    c = pl.program_id(0)
    i = pl.program_id(1)

    @pl.when(i == 0)
    def _init():
        acc_base[...] = jnp.zeros_like(acc_base)
        acc_reg[...] = jnp.zeros_like(acc_reg)

    start = (c * steps_per_split + i) * block_batch
    lane = lax.broadcasted_iota(jnp.int32, (1, block_batch), 1)
    valid_f = ((start + lane) < batch).astype(jnp.float32)

    _accumulate_loss_tile(u_ref[...], p_ref[...], n_ref[...], valid_f,
                          acc_base, acc_reg)

    @pl.when(i == pl.num_programs(1) - 1)
    def _finalize():
        base_ref[...] = acc_base[...].reshape(1, 1, 1)
        reg_ref[...] = acc_reg[...].reshape(1, 1, 1)


def bprmf_loss_fused_pallas(table_user_t, table_item_t, users, items_pos,
                            items_neg, rate_reg, *, block_batch=2048,
                            num_cores=1):
    """Fused gather + BPR loss. table_*_t are (Dp, Np) padded/transposed f32
    tables (kept VMEM-resident); the per-step HBM reads are just the indices."""
    batch = users.shape[0]
    dp, nup = table_user_t.shape
    _, nip = table_item_t.shape
    tb, nsplit, sps, total = _tiling(batch, block_batch, num_cores)

    def prep_idx(idx):
        idx = idx.astype(jnp.int32)
        if total - batch:
            idx = jnp.pad(idx, (0, total - batch))   # pad gathers row 0; masked out
        return idx.reshape(1, total)

    kernel = functools.partial(_bprmf_fused_kernel, batch=batch, block_batch=tb,
                               steps_per_split=sps, n_users_p=nup,
                               n_items_p=nip)
    idx_spec = pl.BlockSpec((1, tb), lambda c, i: (0, c * sps + i))
    out_spec = pl.BlockSpec((1, 1, 1), lambda c, i: (c, 0, 0))
    out_sds = jax.ShapeDtypeStruct((nsplit, 1, 1), jnp.float32)

    gather_macs = dp * (nup + 2 * nip) * total
    cost = pl.CostEstimate(
        flops=2 * gather_macs + 10 * dp * total,
        transcendentals=2 * total,
        bytes_accessed=4 * (dp * (nup + nip) + 3 * total + 2 * nsplit))

    base, reg = pl.pallas_call(
        kernel,
        out_shape=(out_sds, out_sds),
        grid_spec=pltpu.PrefetchScalarGridSpec(
            num_scalar_prefetch=0,
            grid=(nsplit, sps),
            in_specs=[pl.BlockSpec((dp, nup), lambda c, i: (0, 0)),  # resident
                      pl.BlockSpec((dp, nip), lambda c, i: (0, 0)),  # resident
                      idx_spec, idx_spec, idx_spec],
            out_specs=[out_spec, out_spec],
            scratch_shapes=[pltpu.VMEM((1, 1), jnp.float32),
                            pltpu.VMEM((1, 1), jnp.float32)],
        ),
        compiler_params=pltpu.CompilerParams(
            dimension_semantics=("parallel", "arbitrary"),
            vmem_limit_bytes=_VMEM_LIMIT),
        cost_estimate=cost,
    )(table_user_t, table_item_t,
      prep_idx(users), prep_idx(items_pos), prep_idx(items_neg))

    loss_base = jnp.sum(base) / jnp.float32(batch)
    loss_reg = jnp.float32(rate_reg) * 0.5 * jnp.sum(reg)
    return loss_base, loss_reg


def bprmf_loss_rows_pallas(ut, pt, nt, rate_reg, *, block_batch=8192,
                           num_cores=1):
    """BPR loss on pre-gathered, transposed (Dp, B) embedding rows.
    (Large-table fallback; could feed bf16 rows on v5e for ~2x bandwidth.)"""
    dp, batch = ut.shape
    tb, nsplit, sps, total = _tiling(batch, block_batch, num_cores)

    def prep(x):
        if total - batch:
            x = jnp.pad(x, ((0, 0), (0, total - batch)))
        return x

    kernel = functools.partial(_bprmf_rows_kernel, batch=batch, block_batch=tb,
                               steps_per_split=sps)
    in_spec = pl.BlockSpec((dp, tb), lambda c, i: (0, c * sps + i))
    out_spec = pl.BlockSpec((1, 1, 1), lambda c, i: (c, 0, 0))
    out_sds = jax.ShapeDtypeStruct((nsplit, 1, 1), jnp.float32)

    cost = pl.CostEstimate(flops=10 * dp * total,
                           transcendentals=2 * total,
                           bytes_accessed=4 * (3 * dp * total + 2 * nsplit))

    base, reg = pl.pallas_call(
        kernel,
        out_shape=(out_sds, out_sds),
        grid_spec=pltpu.PrefetchScalarGridSpec(
            num_scalar_prefetch=0,
            grid=(nsplit, sps),
            in_specs=[in_spec, in_spec, in_spec],
            out_specs=[out_spec, out_spec],
            scratch_shapes=[pltpu.VMEM((1, 1), jnp.float32),
                            pltpu.VMEM((1, 1), jnp.float32)],
        ),
        compiler_params=pltpu.CompilerParams(
            dimension_semantics=("parallel", "arbitrary"),
            vmem_limit_bytes=_VMEM_LIMIT),
        cost_estimate=cost,
    )(prep(ut), prep(pt), prep(nt))

    loss_base = jnp.sum(base) / jnp.float32(batch)
    loss_reg = jnp.float32(rate_reg) * 0.5 * jnp.sum(reg)
    return loss_base, loss_reg


def xavier_uniform(key, shape, gain):
    # nn.init.xavier_uniform_ for a 2D (fan_out, fan_in) weight.
    fan_out, fan_in = shape
    limit = gain * math.sqrt(6.0 / (fan_in + fan_out))
    return jax.random.uniform(key, shape, jnp.float32, -limit, limit)


class BPRMFPallas:
    def __init__(self, n_users, n_items, dim_embed_global, rate_reg, key):
        gain = math.sqrt(2.0)  # calculate_gain('relu')
        k_u, k_i = jax.random.split(key)
        self.embed_user = xavier_uniform(k_u, (n_users, dim_embed_global), gain)
        self.embed_item = xavier_uniform(k_i, (n_items, dim_embed_global), gain)
        self.rate_reg = rate_reg

        d = dim_embed_global
        dp = _round_up(d, 8)
        nup = _round_up(n_users, LANES)
        nip = _round_up(n_items, LANES)
        # Padded, transposed tables: D on sublanes, rows on lanes.
        self.wuT = jnp.pad(self.embed_user.T, ((0, dp - d), (0, nup - n_users)))
        self.wiT = jnp.pad(self.embed_item.T, ((0, dp - d), (0, nip - n_items)))
        # One-hot MXU gather only pays off / fits VMEM for small tables.
        self._fused_ok = ((nup + 2 * nip) <= 1024
                          and 4 * dp * (nup + nip) <= (4 << 20))

    def __call__(self, users, items_pos, items_neg, *, block_batch=None,
                 num_cores=None, use_fused=None):
        if num_cores is None:
            num_cores = _detect_num_cores()
        fused = self._fused_ok if use_fused is None else use_fused
        if fused:
            return bprmf_loss_fused_pallas(
                self.wuT, self.wiT, users, items_pos, items_neg, self.rate_reg,
                block_batch=block_batch or 2048, num_cores=num_cores)
        # TODO(synk): for large tables, fuse the gather with an in-kernel
        # dynamic gather (jnp.take on VMEM-resident table shards) or a per-tile
        # row-DMA gather instead of this XLA-gather round trip through HBM.
        users = users.astype(jnp.int32)
        items_pos = items_pos.astype(jnp.int32)
        items_neg = items_neg.astype(jnp.int32)
        ut = jnp.take(self.wuT, users, axis=1)       # (Dp, B), already transposed
        pt = jnp.take(self.wiT, items_pos, axis=1)
        nt = jnp.take(self.wiT, items_neg, axis=1)
        return bprmf_loss_rows_pallas(ut, pt, nt, self.rate_reg,
                                      block_batch=block_batch or 8192,
                                      num_cores=num_cores)

    def predict(self, users, items):
        # Plain-JAX glue (the module's forward pass is the loss).
        eu = jnp.take(self.embed_user, users, axis=0)
        ei = jnp.take(self.embed_item, items, axis=0)
        return eu @ ei.T

    def reference(self, users, items_pos, items_neg):
        eu = jnp.take(self.embed_user, users, axis=0)
        ep = jnp.take(self.embed_item, items_pos, axis=0)
        en = jnp.take(self.embed_item, items_neg, axis=0)
        sp = jnp.sum(eu * ep, axis=1)
        sn = jnp.sum(eu * en, axis=1)
        loss_base = jnp.mean(-jax.nn.log_sigmoid(sp - sn))
        l2 = lambda e: jnp.sum(jnp.sum(e * e, axis=1) / 2.0)
        loss_reg = self.rate_reg * (l2(eu) + l2(ep) + l2(en))
        return loss_base, loss_reg


if __name__ == "__main__":
    key = jax.random.PRNGKey(0)
    k_param, k_u, k_p, k_n = jax.random.split(key, 4)

    n_users, n_items, dim_embed, rate_reg = 64, 128, 32, 1e-3
    model = BPRMFPallas(n_users, n_items, dim_embed, rate_reg, k_param)

    # 1) Small batch, fused-gather kernel, single grid step.
    batch = 16
    users = jax.random.randint(k_u, (batch,), 0, n_users, dtype=jnp.int32)
    items_pos = jax.random.randint(k_p, (batch,), 0, n_items, dtype=jnp.int32)
    items_neg = jax.random.randint(k_n, (batch,), 0, n_items, dtype=jnp.int32)

    lb, lr = model(users, items_pos, items_neg)
    jax.block_until_ready((lb, lr))
    rb, rr = model.reference(users, items_pos, items_neg)
    assert jnp.allclose(lb, rb, rtol=1e-5, atol=1e-6), (lb, rb)
    assert jnp.allclose(lr, rr, rtol=1e-5, atol=1e-6), (lr, rr)

    # 2) Ragged batch, small block -> multi-step accumulation + 2-way
    #    "parallel" split + in-kernel masking of padded lanes.
    batch2 = 1000
    k_u2, k_p2, k_n2 = jax.random.split(jax.random.PRNGKey(1), 3)
    users2 = jax.random.randint(k_u2, (batch2,), 0, n_users, dtype=jnp.int32)
    items_pos2 = jax.random.randint(k_p2, (batch2,), 0, n_items, dtype=jnp.int32)
    items_neg2 = jax.random.randint(k_n2, (batch2,), 0, n_items, dtype=jnp.int32)

    lb2, lr2 = model(users2, items_pos2, items_neg2, block_batch=256,
                     num_cores=2)
    jax.block_until_ready((lb2, lr2))
    rb2, rr2 = model.reference(users2, items_pos2, items_neg2)
    assert jnp.allclose(lb2, rb2, rtol=1e-4, atol=1e-5), (lb2, rb2)
    assert jnp.allclose(lr2, rr2, rtol=1e-4, atol=1e-5), (lr2, rr2)

    # 3) Same batch through the large-table fallback path (XLA gather feeding
    #    the pre-gathered-rows kernel).
    lb3, lr3 = model(users2, items_pos2, items_neg2, block_batch=256,
                     num_cores=1, use_fused=False)
    jax.block_until_ready((lb3, lr3))
    assert jnp.allclose(lb3, rb2, rtol=1e-4, atol=1e-5), (lb3, rb2)
    assert jnp.allclose(lr3, rr2, rtol=1e-4, atol=1e-5), (lr3, rr2)

    print("KERNEL_OK")
</pallas_src>

<mosaic_0001>
module attributes {stable_mosaic.version = 11 : i64} {
  func.func @_bprmf_fused_kernel(%arg0: i32, %arg1: i32, %arg2: memref<32x128xf32, #tpu.memory_space<vmem>>, %arg3: memref<32x128xf32, #tpu.memory_space<vmem>>, %arg4: memref<1x128xi32, #tpu.memory_space<vmem>>, %arg5: memref<1x128xi32, #tpu.memory_space<vmem>>, %arg6: memref<1x128xi32, #tpu.memory_space<vmem>>, %arg7: memref<1x1x1xf32, #tpu.memory_space<vmem>>, %arg8: memref<1x1x1xf32, #tpu.memory_space<vmem>>, %arg9: memref<1x1xf32, #tpu.memory_space<vmem>>, %arg10: memref<1x1xf32, #tpu.memory_space<vmem>>) attributes {dimension_semantics = [#tpu.dimension_semantics<parallel>, #tpu.dimension_semantics<arbitrary>], iteration_bounds = array<i64: 1, 1>, scalar_prefetch = 0 : i64, scratch_operands = 2 : i64, tpu.core_type = #tpu.core_type<tc>, window_params = [{pipeline_mode = #tpu.pipeline_mode<synchronous>, transform_indices = @transform_0, window_bounds = array<i64: 32, 128>}, {pipeline_mode = #tpu.pipeline_mode<synchronous>, transform_indices = @transform_1, window_bounds = array<i64: 32, 128>}, {transform_indices = @transform_2, window_bounds = array<i64: 1, 128>}, {transform_indices = @transform_3, window_bounds = array<i64: 1, 128>}, {transform_indices = @transform_4, window_bounds = array<i64: 1, 128>}, {transform_indices = @transform_5, window_bounds = array<i64: 1, 1, 1>}, {transform_indices = @transform_6, window_bounds = array<i64: 1, 1, 1>}]} {
    %c0_i32 = arith.constant 0 : i32
    %0 = arith.cmpi eq, %arg1, %c0_i32 : i32
    %1 = arith.extui %0 : i1 to i32
    %c0_i32_0 = arith.constant 0 : i32
    %2 = arith.cmpi ne, %1, %c0_i32_0 : i32
    scf.if %2 {
      %cst_30 = arith.constant 0.000000e+00 : f32
      %78 = vector.broadcast %cst_30 : f32 to vector<1x1xf32>
      %c0_31 = arith.constant 0 : index
      %c0_32 = arith.constant 0 : index
      %79 = vector.load %arg9[%c0_31, %c0_32] : memref<1x1xf32, #tpu.memory_space<vmem>>, vector<1x1xf32>
      tpu.vector_store %arg9[%c0_31, %c0_32], %78 {strides = array<i32>} : memref<1x1xf32, #tpu.memory_space<vmem>>, vector<1x1xf32>,
      %cst_33 = arith.constant 0.000000e+00 : f32
      %80 = vector.broadcast %cst_33 : f32 to vector<1x1xf32>
      %c0_34 = arith.constant 0 : index
      %c0_35 = arith.constant 0 : index
      %81 = vector.load %arg10[%c0_34, %c0_35] : memref<1x1xf32, #tpu.memory_space<vmem>>, vector<1x1xf32>
      tpu.vector_store %arg10[%c0_34, %c0_35], %80 {strides = array<i32>} : memref<1x1xf32, #tpu.memory_space<vmem>>, vector<1x1xf32>,
    } else {
    }
    %c0 = arith.constant 0 : index
    %c0_1 = arith.constant 0 : index
    %3 = vector.load %arg4[%c0, %c0_1] : memref<1x128xi32, #tpu.memory_space<vmem>>, vector<1x128xi32>
    %4 = tpu.iota {dimensions = array<i32: 0>} : vector<128x128xi32>
    %5 = vector.broadcast %3 : vector<1x128xi32> to vector<128x128xi32>
    %6 = arith.cmpi eq, %4, %5 : vector<128x128xi32>
    %7 = arith.extui %6 : vector<128x128xi1> to vector<128x128xi32>
    %8 = arith.sitofp %7 : vector<128x128xi32> to vector<128x128xf32>
    %c0_2 = arith.constant 0 : index
    %c0_3 = arith.constant 0 : index
    %9 = vector.load %arg2[%c0_2, %c0_3] : memref<32x128xf32, #tpu.memory_space<vmem>>, vector<32x128xf32>
    %cst = arith.constant dense<0.000000e+00> : vector<32x128xf32>
    %10 = tpu.matmul %9, %8, %cst {dimension_numbers = #tpu.dot_dimension_numbers<[1], [0], [0], [1], [0, 0, 1, 1], [], []>} : vector<32x128xf32>, vector<128x128xf32>, vector<32x128xf32> -> vector<32x128xf32>
    %c0_4 = arith.constant 0 : index
    %c0_5 = arith.constant 0 : index
    %11 = vector.load %arg5[%c0_4, %c0_5] : memref<1x128xi32, #tpu.memory_space<vmem>>, vector<1x128xi32>
    %12 = tpu.iota {dimensions = array<i32: 0>} : vector<128x128xi32>
    %13 = vector.broadcast %11 : vector<1x128xi32> to vector<128x128xi32>
    %14 = arith.cmpi eq, %12, %13 : vector<128x128xi32>
    %15 = arith.extui %14 : vector<128x128xi1> to vector<128x128xi32>
    %16 = arith.sitofp %15 : vector<128x128xi32> to vector<128x128xf32>
    %c0_6 = arith.constant 0 : index
    %c0_7 = arith.constant 0 : index
    %17 = vector.load %arg3[%c0_6, %c0_7] : memref<32x128xf32, #tpu.memory_space<vmem>>, vector<32x128xf32>
    %cst_8 = arith.constant dense<0.000000e+00> : vector<32x128xf32>
    %18 = tpu.matmul %17, %16, %cst_8 {dimension_numbers = #tpu.dot_dimension_numbers<[1], [0], [0], [1], [0, 0, 1, 1], [], []>} : vector<32x128xf32>, vector<128x128xf32>, vector<32x128xf32> -> vector<32x128xf32>
    %c0_9 = arith.constant 0 : index
    %c0_10 = arith.constant 0 : index
    %19 = vector.load %arg6[%c0_9, %c0_10] : memref<1x128xi32, #tpu.memory_space<vmem>>, vector<1x128xi32>
    %20 = tpu.iota {dimensions = array<i32: 0>} : vector<128x128xi32>
    %21 = vector.broadcast %19 : vector<1x128xi32> to vector<128x128xi32>
    %22 = arith.cmpi eq, %20, %21 : vector<128x128xi32>
    %23 = arith.extui %22 : vector<128x128xi1> to vector<128x128xi32>
    %24 = arith.sitofp %23 : vector<128x128xi32> to vector<128x128xf32>
    %c0_11 = arith.constant 0 : index
    %c0_12 = arith.constant 0 : index
    %25 = vector.load %arg3[%c0_11, %c0_12] : memref<32x128xf32, #tpu.memory_space<vmem>>, vector<32x128xf32>
    %cst_13 = arith.constant dense<0.000000e+00> : vector<32x128xf32>
    %26 = tpu.matmul %25, %24, %cst_13 {dimension_numbers = #tpu.dot_dimension_numbers<[1], [0], [0], [1], [0, 0, 1, 1], [], []>} : vector<32x128xf32>, vector<128x128xf32>, vector<32x128xf32> -> vector<32x128xf32>
    %c1_i32 = arith.constant 1 : i32
    %27 = arith.muli %arg0, %c1_i32 : i32
    %28 = arith.addi %27, %arg1 : i32
    %c128_i32 = arith.constant 128 : i32
    %29 = arith.muli %28, %c128_i32 : i32
    %30 = tpu.iota {dimensions = array<i32: 1>} : vector<1x128xi32>
    %31 = vector.broadcast %29 : i32 to vector<1x128xi32>
    %32 = arith.addi %31, %30 : vector<1x128xi32>
    %c16_i32 = arith.constant 16 : i32
    %33 = vector.broadcast %c16_i32 : i32 to vector<1x128xi32>
    %34 = arith.cmpi slt, %32, %33 : vector<1x128xi32>
    %35 = arith.extui %34 : vector<1x128xi1> to vector<1x128xi32>
    %36 = arith.sitofp %35 : vector<1x128xi32> to vector<1x128xf32>
    %37 = arith.subf %18, %26 : vector<32x128xf32>
    %38 = arith.mulf %10, %37 : vector<32x128xf32>
    %cst_14 = arith.constant dense<0.000000e+00> : vector<128xf32>
    %39 = vector.multi_reduction <add>, %38, %cst_14 [0] : vector<32x128xf32> to vector<128xf32>
    %40 = vector.shape_cast %39 : vector<128xf32> to vector<1x128xf32>
    %cst_15 = arith.constant 0.000000e+00 : f32
    %41 = vector.broadcast %cst_15 : f32 to vector<1x128xf32>
    %42 = arith.subf %41, %40 : vector<1x128xf32>
    %cst_16 = arith.constant 0.000000e+00 : f32
    %43 = vector.broadcast %cst_16 : f32 to vector<1x128xf32>
    %44 = arith.maximumf %42, %43 : vector<1x128xf32>
    %45 = math.absf %40 : vector<1x128xf32>
    %cst_17 = arith.constant 0.000000e+00 : f32
    %46 = vector.broadcast %cst_17 : f32 to vector<1x128xf32>
    %47 = arith.subf %46, %45 : vector<1x128xf32>
    %48 = math.exp %47 : vector<1x128xf32>
    %49 = math.log1p %48 : vector<1x128xf32>
    %50 = arith.addf %44, %49 : vector<1x128xf32>
    %51 = arith.mulf %10, %10 : vector<32x128xf32>
    %52 = arith.mulf %18, %18 : vector<32x128xf32>
    %53 = arith.addf %51, %52 : vector<32x128xf32>
    %54 = arith.mulf %26, %26 : vector<32x128xf32>
    %55 = arith.addf %53, %54 : vector<32x128xf32>
    %c0_18 = arith.constant 0 : index
    %c0_19 = arith.constant 0 : index
    %56 = vector.load %arg9[%c0_18, %c0_19] : memref<1x1xf32, #tpu.memory_space<vmem>>, vector<1x1xf32>
    %57 = arith.mulf %50, %36 : vector<1x128xf32>
    %58 = vector.shape_cast %57 : vector<1x128xf32> to vector<1x1x128xf32>
    %cst_20 = arith.constant dense<0.000000e+00> : vector<1xf32>
    %59 = vector.multi_reduction <add>, %58, %cst_20 [1, 2] : vector<1x1x128xf32> to vector<1xf32>
    %60 = vector.shape_cast %59 : vector<1xf32> to vector<1x1x1xf32>
    %61 = vector.extract %60[0, 0, 0] : f32 from vector<1x1x1xf32>
    %62 = vector.broadcast %61 : f32 to vector<1x1xf32>
    %63 = arith.addf %56, %62 : vector<1x1xf32>
    %c0_21 = arith.constant 0 : index
    %c0_22 = arith.constant 0 : index
    %64 = vector.load %arg9[%c0_21, %c0_22] : memref<1x1xf32, #tpu.memory_space<vmem>>, vector<1x1xf32>
    tpu.vector_store %arg9[%c0_21, %c0_22], %63 {strides = array<i32>} : memref<1x1xf32, #tpu.memory_space<vmem>>, vector<1x1xf32>,
    %c0_23 = arith.constant 0 : index
    %c0_24 = arith.constant 0 : index
    %65 = vector.load %arg10[%c0_23, %c0_24] : memref<1x1xf32, #tpu.memory_space<vmem>>, vector<1x1xf32>
    %66 = vector.broadcast %36 : vector<1x128xf32> to vector<32x128xf32>
    %67 = arith.mulf %55, %66 : vector<32x128xf32>
    %68 = vector.shape_cast %67 : vector<32x128xf32> to vector<1x32x128xf32>
    %cst_25 = arith.constant dense<0.000000e+00> : vector<1xf32>
    %69 = vector.multi_reduction <add>, %68, %cst_25 [1, 2] : vector<1x32x128xf32> to vector<1xf32>
    %70 = vector.shape_cast %69 : vector<1xf32> to vector<1x1x1xf32>
    %71 = vector.extract %70[0, 0, 0] : f32 from vector<1x1x1xf32>
    %72 = vector.broadcast %71 : f32 to vector<1x1xf32>
    %73 = arith.addf %65, %72 : vector<1x1xf32>
    %c0_26 = arith.constant 0 : index
    %c0_27 = arith.constant 0 : index
    %74 = vector.load %arg10[%c0_26, %c0_27] : memref<1x1xf32, #tpu.memory_space<vmem>>, vector<1x1xf32>
    tpu.vector_store %arg10[%c0_26, %c0_27], %73 {strides = array<i32>} : memref<1x1xf32, #tpu.memory_space<vmem>>, vector<1x1xf32>,
    %c0_i32_28 = arith.constant 0 : i32
    %75 = arith.cmpi eq, %arg1, %c0_i32_28 : i32
    %76 = arith.extui %75 : i1 to i32
    %c0_i32_29 = arith.constant 0 : i32
    %77 = arith.cmpi ne, %76, %c0_i32_29 : i32
    scf.if %77 {
      %c0_30 = arith.constant 0 : index
      %c0_31 = arith.constant 0 : index
      %78 = vector.load %arg9[%c0_30, %c0_31] : memref<1x1xf32, #tpu.memory_space<vmem>>, vector<1x1xf32>
      %79 = vector.shape_cast %78 : vector<1x1xf32> to vector<1x1x1xf32>
      %c0_32 = arith.constant 0 : index
      %c0_33 = arith.constant 0 : index
      %c0_34 = arith.constant 0 : index
      %80 = vector.load %arg7[%c0_32, %c0_33, %c0_34] : memref<1x1x1xf32, #tpu.memory_space<vmem>>, vector<1x1x1xf32>
      tpu.vector_store %arg7[%c0_32, %c0_33, %c0_34], %79 {strides = array<i32>} : memref<1x1x1xf32, #tpu.memory_space<vmem>>, vector<1x1x1xf32>,
      %c0_35 = arith.constant 0 : index
      %c0_36 = arith.constant 0 : index
      %81 = vector.load %arg10[%c0_35, %c0_36] : memref<1x1xf32, #tpu.memory_space<vmem>>, vector<1x1xf32>
      %82 = vector.shape_cast %81 : vector<1x1xf32> to vector<1x1x1xf32>
      %c0_37 = arith.constant 0 : index
      %c0_38 = arith.constant 0 : index
      %c0_39 = arith.constant 0 : index
      %83 = vector.load %arg8[%c0_37, %c0_38, %c0_39] : memref<1x1x1xf32, #tpu.memory_space<vmem>>, vector<1x1x1xf32>
      tpu.vector_store %arg8[%c0_37, %c0_38, %c0_39], %82 {strides = array<i32>} : memref<1x1x1xf32, #tpu.memory_space<vmem>>, vector<1x1x1xf32>,
    } else {
    }
    return
  }
  func.func @transform_0(%arg0: i32, %arg1: i32) -> (i32, i32) {
    %c0_i32 = arith.constant 0 : i32
    %c0_i32_0 = arith.constant 0 : i32
    %c0_i32_1 = arith.constant 0 : i32
    return %c0_i32, %c0_i32_0 : i32, i32
  }
  func.func @transform_1(%arg0: i32, %arg1: i32) -> (i32, i32) {
    %c0_i32 = arith.constant 0 : i32
    %c0_i32_0 = arith.constant 0 : i32
    %c0_i32_1 = arith.constant 0 : i32
    return %c0_i32, %c0_i32_0 : i32, i32
  }
  func.func @transform_2(%arg0: i32, %arg1: i32) -> (i32, i32) {
    %c1_i32 = arith.constant 1 : i32
    %0 = arith.muli %arg0, %c1_i32 : i32
    %1 = arith.addi %0, %arg1 : i32
    %c0_i32 = arith.constant 0 : i32
    %c0_i32_0 = arith.constant 0 : i32
    return %c0_i32, %1 : i32, i32
  }
  func.func @transform_3(%arg0: i32, %arg1: i32) -> (i32, i32) {
    %c1_i32 = arith.constant 1 : i32
    %0 = arith.muli %arg0, %c1_i32 : i32
    %1 = arith.addi %0, %arg1 : i32
    %c0_i32 = arith.constant 0 : i32
    %c0_i32_0 = arith.constant 0 : i32
    return %c0_i32, %1 : i32, i32
  }
  func.func @transform_4(%arg0: i32, %arg1: i32) -> (i32, i32) {
    %c1_i32 = arith.constant 1 : i32
    %0 = arith.muli %arg0, %c1_i32 : i32
    %1 = arith.addi %0, %arg1 : i32
    %c0_i32 = arith.constant 0 : i32
    %c0_i32_0 = arith.constant 0 : i32
    return %c0_i32, %1 : i32, i32
  }
  func.func @transform_5(%arg0: i32, %arg1: i32) -> (i32, i32, i32) {
    %c0_i32 = arith.constant 0 : i32
    %c0_i32_0 = arith.constant 0 : i32
    %c0_i32_1 = arith.constant 0 : i32
    return %arg0, %c0_i32, %c0_i32_0 : i32, i32, i32
  }
  func.func @transform_6(%arg0: i32, %arg1: i32) -> (i32, i32, i32) {
    %c0_i32 = arith.constant 0 : i32
    %c0_i32_0 = arith.constant 0 : i32
    %c0_i32_1 = arith.constant 0 : i32
    return %arg0, %c0_i32, %c0_i32_0 : i32, i32, i32
  }
}

</mosaic_0001>

<bundles_post_ra>
// kernel: tpu_custom_call.1
= control target key start
LH: loop header
LB: loop body
LE: loop exit
PB: predicated region body
PF: predicated region fallthrough
CT: control target
= control target key end

     0   :  { %12 = vsyncpa [#allocation5], 0  ;;  %s1452_s0 = inlined_call_operand.hbm [shape: f32[32,128], index: 0, kind: input, shape index: {}]   ;;  %s1453_s1 = inlined_call_operand.hbm [shape: f32[32,128], index: 1, kind: input, shape index: {}]   ;;  %s1454_s2 = inlined_call_operand.vmem [shape: s32[1,128], index: 2, kind: input, shape index: {}]   ;;  %s1455_s3 = inlined_call_operand.vmem [shape: s32[1,128], index: 3, kind: input, shape index: {}]   ;;  %s1456_s4 = inlined_call_operand.vmem [shape: s32[1,128], index: 4, kind: input, shape index: {}]   ;;  %s1457_s5 = inlined_call_operand.hbm [shape: f32[1,1,1], index: 5, kind: output, shape index: {0}]   ;;  %s1458_s6 = inlined_call_operand.hbm [shape: f32[1,1,1], index: 6, kind: output, shape index: {1}]  }
   0x1   :  { %13 = vsyncpa [#allocation8], 0 }
   0x2   :  { %14 = vsyncpa [#allocation6], 0 }
   0x3   :  { %15 = vsyncpa [#allocation11], 0  ;;  %s1095_s21 = smov [#allocation4]  }
   0x4   :  { %s21_s22 = sshll.u32 %s1095_s21, 4  ;;  %s22_s22 = int_to_ptr.vmem [resolvable:$true] %s21_s22 }
   0x5   :  { %s1015_s23 = scalar_lea.vmem %s22_s22, 512  ;;  %p1020_p1 = scmp.lt.s32.totalorder %s22_s22, %s22_s22 }
   0x6   :  { %p1016_p0 = scmp.ne.s32.totalorder %s22_s22, %s1015_s23  ;;  %p1021_p2 = scmp.lt.s32.totalorder %s1015_s23, %s1015_s23 }
   0x8   :  { %p1022_p3 = por %p1021_p2, %p1020_p1 }
   0xa   :  { %p1023_p4 = pnand %p1022_p3, %p1016_p0 }
   0xc   :  { %1026 = shalt.err (!%p1023_p4)
}
   0xd   :  { %s1096_s24 = smov 128   ;;  %s1097_s25 = smov 8  }
   0xe   :  { %27 = dma.hbm_to_vmem [thread:$0]  %s1452_s0, 512, %s22_s22, [#allocation5], %s1096_s24, %s1096_s24, %s1097_s25  }
   0xf   :  { %s1098_s28 = smov [#allocation7]  }
  0x10   :  { %s33_s29 = sshll.u32 %s1098_s28, 4  ;;  %s34_s29 = int_to_ptr.vmem [resolvable:$true] %s33_s29 }
  0x11   :  { %s1035_s30 = scalar_lea.vmem %s34_s29, 512  ;;  %p1040_p6 = scmp.lt.s32.totalorder %s34_s29, %s34_s29 }
  0x12   :  { %p1036_p5 = scmp.ne.s32.totalorder %s34_s29, %s1035_s30  ;;  %p1041_p7 = scmp.lt.s32.totalorder %s1035_s30, %s1035_s30 }
  0x14   :  { %p1042_p8 = por %p1041_p7, %p1040_p6 }
  0x16   :  { %p1043_p9 = pnand %p1042_p8, %p1036_p5 }
  0x18   :  { %1046 = shalt.err (!%p1043_p9)
}
  0x19   :  { %39 = dma.hbm_to_vmem [thread:$0]  %s1453_s1, 512, %s34_s29, [#allocation8], %s1096_s24, %s1096_s24, %s1097_s25  }
  0x1a   :  { %1087 = dma.done.wait [#allocation5], 512  }
  0x1b   :  { %1088 = vsyncadd [#allocation5], 4294966784 }
  0x1c   :  { %1089 = dma.done.wait [#allocation8], 512  }
  0x1d   :  { %1090 = vsyncadd [#allocation8], 4294966784  ;;  %v102_v0 = vlaneseq  ;;  %v1159_v5 = vld [vmem:[%s1454_s2] ss:$0 sm:$0xff]  ;;  %v1099_v8 = vmov 1.0   ;;  %v171_v20 = vld [vmem:[#allocation4] sm:$0xff] }
  0x1e   :  { %v1164_v6 = vld [vmem:[%s1455_s3] ss:$0 sm:$0xff]  ;;  %v1331_v22 = vld [vmem:[#allocation7] sm:$0xff]  ;;  %v172_v23 = vld [vmem:[#allocation4 + $0x8] sm:$0xff]  ;;  %877 = vmatprep.mubr.f32.mxu0 %v171_v20  ;;  %v1100_v62 = vmov 0.0   ;;  %s1101_s12 = smov [#allocation9]  }
  0x1f   :  { %v1145_v1 = vshrl.u32 %v102_v0, 7  ;;  %v1327_v21 = vld [vmem:[%s1456_s4] ss:$0 sm:$0xff]  ;;  %v1335_v24 = vld [vmem:[#allocation7 + $0x8] sm:$0xff]  ;;  %915 = vmatprep.mubr.f32.mxu1 %v1331_v22  ;;  %v173_v25 = vld [vmem:[#allocation4 + $0x10] sm:$0xff]  ;;  %v543_v43 = vand.u32 127, %v102_v0 }
  0x20   :  { %v315_v26 = vld [vmem:[#allocation7 + $0x10] sm:$0xff]  ;;  %v174_v27 = vld [vmem:[#allocation4 + $0x18] sm:$0xff]  ;;  %s652_s13 = sshll.u32 %s1101_s12, 4  ;;  %s1102_s14 = smov [#allocation10]   ;;  %s653_s13 = int_to_ptr.vmem [resolvable:$true] %s652_s13 }
  0x21   :  { %v1148_v2 = vadd.s32 120, %v1145_v1  ;;  %v1151_v3 = vadd.s32 112, %v1145_v1  ;;  %v1154_v4 = vadd.s32 104, %v1145_v1  ;;  %v1167_v7 = vadd.s32 96, %v1145_v1  ;;  %v316_v28 = vld [vmem:[#allocation7 + $0x18] sm:$0xff]  ;;  %s662_s15 = sshll.u32 %s1102_s14, 4  ;;  %p1052_p11 = scmp.lt.s32.totalorder %s653_s13, %s653_s13  ;;  %s663_s15 = int_to_ptr.vmem [resolvable:$true] %s662_s15 }
  0x22   :  { %v1186_v9 = vadd.s32 88, %v1145_v1  ;;  %v1197_v10 = vadd.s32 80, %v1145_v1  ;;  %v1208_v11 = vadd.s32 72, %v1145_v1  ;;  %v1219_v12 = vadd.s32 64, %v1145_v1  ;;  %s1047_s16 = scalar_lea.vmem %s653_s13, 16  ;;  %s1051_s17 = scalar_lea.vmem %s653_s13, 32 }
  0x23   :  { %vm138_vm0 = vcmp.eq.s32.totalorder %v1148_v2, %v1159_v5  ;;  %vm280_vm1 = vcmp.eq.s32.totalorder %v1148_v2, %v1164_v6  ;;  %vm137_vm2 = vcmp.eq.s32.totalorder %v1151_v3, %v1159_v5  ;;  %vm279_vm3 = vcmp.eq.s32.totalorder %v1151_v3, %v1164_v6  ;;  %p1048_p10 = scmp.ne.s32.totalorder %s653_s13, %s1047_s16  ;;  %p1053_p12 = scmp.lt.s32.totalorder %s1051_s17, %s1047_s16 }
  0x24   :  { %845 = vmatprep.subr.msk.mxu0 %vm138_vm0, %v1099_v8  ;;  %883 = vmatprep.subr.msk.mxu1 %vm280_vm1, %v1099_v8  ;;  %vm136_vm4 = vcmp.eq.s32.totalorder %v1154_v4, %v1159_v5  ;;  %vm278_vm5 = vcmp.eq.s32.totalorder %v1154_v4, %v1164_v6  ;;  %vm135_vm6 = vcmp.eq.s32.totalorder %v1167_v7, %v1159_v5  ;;  %v1230_v13 = vadd.s32 56, %v1145_v1 }
  0x25   :  { %846 = vmatpush3.msk.msra.mxu0 %vm138_vm0, %v1099_v8  ;;  %884 = vmatpush3.msk.msra.mxu1 %vm280_vm1, %v1099_v8  ;;  %vm277_vm7 = vcmp.eq.s32.totalorder %v1167_v7, %v1164_v6  ;;  %vm134_vm8 = vcmp.eq.s32.totalorder %v1186_v9, %v1159_v5  ;;  %vm276_vm9 = vcmp.eq.s32.totalorder %v1186_v9, %v1164_v6  ;;  %v1241_v14 = vadd.s32 48, %v1145_v1  ;;  %p1054_p13 = por %p1053_p12, %p1052_p11 }
  0x26   :  { %847 = vmatprep.subr.msk.mxu0 %vm137_vm2, %v1099_v8  ;;  %885 = vmatprep.subr.msk.mxu1 %vm279_vm3, %v1099_v8  ;;  %vm133_vm10 = vcmp.eq.s32.totalorder %v1197_v10, %v1159_v5  ;;  %vm275_vm11 = vcmp.eq.s32.totalorder %v1197_v10, %v1164_v6  ;;  %vm132_vm12 = vcmp.eq.s32.totalorder %v1208_v11, %v1159_v5  ;;  %v1252_v15 = vadd.s32 40, %v1145_v1 }
  0x27   :  { %848 = vmatpush3.msk.msra.mxu0 %vm137_vm2, %v1099_v8  ;;  %886 = vmatpush3.msk.msra.mxu1 %vm279_vm3, %v1099_v8  ;;  %vm274_vm13 = vcmp.eq.s32.totalorder %v1208_v11, %v1164_v6  ;;  %vm131_vm14 = vcmp.eq.s32.totalorder %v1219_v12, %v1159_v5  ;;  %vm273_vm15 = vcmp.eq.s32.totalorder %v1219_v12, %v1164_v6  ;;  %v1263_v16 = vadd.s32 32, %v1145_v1  ;;  %p1055_p0 = pnand %p1054_p13, %p1048_p10 }
  0x28   :  { %849 = vmatprep.subr.msk.mxu0 %vm136_vm4, %v1099_v8  ;;  %887 = vmatprep.subr.msk.mxu1 %vm278_vm5, %v1099_v8  ;;  %vm130_vm0 = vcmp.eq.s32.totalorder %v1230_v13, %v1159_v5  ;;  %vm272_vm1 = vcmp.eq.s32.totalorder %v1230_v13, %v1164_v6  ;;  %vm129_vm2 = vcmp.eq.s32.totalorder %v1241_v14, %v1159_v5  ;;  %v1274_v17 = vadd.s32 24, %v1145_v1 }
  0x29   :  { %850 = vmatpush3.msk.msra.mxu0 %vm136_vm4, %v1099_v8  ;;  %888 = vmatpush3.msk.msra.mxu1 %vm278_vm5, %v1099_v8  ;;  %vm271_vm3 = vcmp.eq.s32.totalorder %v1241_v14, %v1164_v6  ;;  %vm128_vm4 = vcmp.eq.s32.totalorder %v1252_v15, %v1159_v5  ;;  %vm270_vm5 = vcmp.eq.s32.totalorder %v1252_v15, %v1164_v6  ;;  %v1285_v18 = vadd.s32 16, %v1145_v1 }
  0x2a   :  { %851 = vmatprep.subr.msk.mxu0 %vm135_vm6, %v1099_v8  ;;  %889 = vmatprep.subr.msk.mxu1 %vm277_vm7, %v1099_v8  ;;  %v1296_v19 = vadd.s32 8, %v1145_v1 }
  0x2b   :  { %852 = vmatpush3.msk.msra.mxu0 %vm135_vm6, %v1099_v8  ;;  %890 = vmatpush3.msk.msra.mxu1 %vm277_vm7, %v1099_v8  ;;  %vm127_vm6 = vcmp.eq.s32.totalorder %v1263_v16, %v1159_v5  ;;  %vm269_vm7 = vcmp.eq.s32.totalorder %v1263_v16, %v1164_v6 }
  0x2c   :  { %853 = vmatprep.subr.msk.mxu0 %vm134_vm8, %v1099_v8  ;;  %891 = vmatprep.subr.msk.mxu1 %vm276_vm9, %v1099_v8 }
  0x2d   :  { %854 = vmatpush3.msk.msra.mxu0 %vm134_vm8, %v1099_v8  ;;  %892 = vmatpush3.msk.msra.mxu1 %vm276_vm9, %v1099_v8  ;;  %vm126_vm8 = vcmp.eq.s32.totalorder %v1274_v17, %v1159_v5  ;;  %vm268_vm9 = vcmp.eq.s32.totalorder %v1274_v17, %v1164_v6 }
  0x2e   :  { %855 = vmatprep.subr.msk.mxu0 %vm133_vm10, %v1099_v8  ;;  %893 = vmatprep.subr.msk.mxu1 %vm275_vm11, %v1099_v8 }
  0x2f   :  { %856 = vmatpush3.msk.msra.mxu0 %vm133_vm10, %v1099_v8  ;;  %894 = vmatpush3.msk.msra.mxu1 %vm275_vm11, %v1099_v8  ;;  %vm125_vm10 = vcmp.eq.s32.totalorder %v1285_v18, %v1159_v5  ;;  %vm267_vm11 = vcmp.eq.s32.totalorder %v1285_v18, %v1164_v6 }
  0x30   :  { %857 = vmatprep.subr.msk.mxu0 %vm132_vm12, %v1099_v8  ;;  %895 = vmatprep.subr.msk.mxu1 %vm274_vm13, %v1099_v8 }
  0x31   :  { %858 = vmatpush3.msk.msra.mxu0 %vm132_vm12, %v1099_v8  ;;  %896 = vmatpush3.msk.msra.mxu1 %vm274_vm13, %v1099_v8  ;;  %vm124_vm12 = vcmp.eq.s32.totalorder %v1296_v19, %v1159_v5  ;;  %vm266_vm13 = vcmp.eq.s32.totalorder %v1296_v19, %v1164_v6 }
  0x32   :  { %859 = vmatprep.subr.msk.mxu0 %vm131_vm14, %v1099_v8  ;;  %897 = vmatprep.subr.msk.mxu1 %vm273_vm15, %v1099_v8 }
  0x33   :  { %860 = vmatpush3.msk.msra.mxu0 %vm131_vm14, %v1099_v8  ;;  %898 = vmatpush3.msk.msra.mxu1 %vm273_vm15, %v1099_v8  ;;  %vm123_vm14 = vcmp.eq.s32.totalorder %v1145_v1, %v1159_v5  ;;  %vm265_vm15 = vcmp.eq.s32.totalorder %v1145_v1, %v1164_v6 }
  0x34   :  { %861 = vmatprep.subr.msk.mxu0 %vm130_vm0, %v1099_v8  ;;  %899 = vmatprep.subr.msk.mxu1 %vm272_vm1, %v1099_v8 }
  0x35   :  { %862 = vmatpush3.msk.msra.mxu0 %vm130_vm0, %v1099_v8  ;;  %900 = vmatpush3.msk.msra.mxu1 %vm272_vm1, %v1099_v8  ;;  %vm422_vm0 = vcmp.eq.s32.totalorder %v1148_v2, %v1327_v21  ;;  %vm421_vm1 = vcmp.eq.s32.totalorder %v1151_v3, %v1327_v21 }
  0x36   :  { %863 = vmatprep.subr.msk.mxu0 %vm129_vm2, %v1099_v8  ;;  %901 = vmatprep.subr.msk.mxu1 %vm271_vm3, %v1099_v8 }
  0x37   :  { %864 = vmatpush3.msk.msra.mxu0 %vm129_vm2, %v1099_v8  ;;  %902 = vmatpush3.msk.msra.mxu1 %vm271_vm3, %v1099_v8  ;;  %vm420_vm2 = vcmp.eq.s32.totalorder %v1154_v4, %v1327_v21  ;;  %vm419_vm3 = vcmp.eq.s32.totalorder %v1167_v7, %v1327_v21 }
  0x38   :  { %865 = vmatprep.subr.msk.mxu0 %vm128_vm4, %v1099_v8  ;;  %903 = vmatprep.subr.msk.mxu1 %vm270_vm5, %v1099_v8 }
  0x39   :  { %866 = vmatpush3.msk.msra.mxu0 %vm128_vm4, %v1099_v8  ;;  %904 = vmatpush3.msk.msra.mxu1 %vm270_vm5, %v1099_v8  ;;  %vm418_vm4 = vcmp.eq.s32.totalorder %v1186_v9, %v1327_v21  ;;  %vm417_vm5 = vcmp.eq.s32.totalorder %v1197_v10, %v1327_v21 }
  0x3a   :  { %867 = vmatprep.subr.msk.mxu0 %vm127_vm6, %v1099_v8  ;;  %905 = vmatprep.subr.msk.mxu1 %vm269_vm7, %v1099_v8 }
  0x3b   :  { %868 = vmatpush3.msk.msra.mxu0 %vm127_vm6, %v1099_v8  ;;  %906 = vmatpush3.msk.msra.mxu1 %vm269_vm7, %v1099_v8  ;;  %vm416_vm6 = vcmp.eq.s32.totalorder %v1208_v11, %v1327_v21  ;;  %vm415_vm7 = vcmp.eq.s32.totalorder %v1219_v12, %v1327_v21 }
  0x3c   :  { %869 = vmatprep.subr.msk.mxu0 %vm126_vm8, %v1099_v8  ;;  %907 = vmatprep.subr.msk.mxu1 %vm268_vm9, %v1099_v8 }
  0x3d   :  { %870 = vmatpush3.msk.msra.mxu0 %vm126_vm8, %v1099_v8  ;;  %908 = vmatpush3.msk.msra.mxu1 %vm268_vm9, %v1099_v8  ;;  %vm414_vm8 = vcmp.eq.s32.totalorder %v1230_v13, %v1327_v21  ;;  %vm413_vm9 = vcmp.eq.s32.totalorder %v1241_v14, %v1327_v21 }
  0x3e   :  { %871 = vmatprep.subr.msk.mxu0 %vm125_vm10, %v1099_v8  ;;  %909 = vmatprep.subr.msk.mxu1 %vm267_vm11, %v1099_v8 }
  0x3f   :  { %872 = vmatpush3.msk.msra.mxu0 %vm125_vm10, %v1099_v8  ;;  %910 = vmatpush3.msk.msra.mxu1 %vm267_vm11, %v1099_v8  ;;  %vm412_vm10 = vcmp.eq.s32.totalorder %v1252_v15, %v1327_v21  ;;  %vm411_vm11 = vcmp.eq.s32.totalorder %v1263_v16, %v1327_v21 }
  0x40   :  { %873 = vmatprep.subr.msk.mxu0 %vm124_vm12, %v1099_v8  ;;  %911 = vmatprep.subr.msk.mxu1 %vm266_vm13, %v1099_v8 }
  0x41   :  { %874 = vmatpush3.msk.msra.mxu0 %vm124_vm12, %v1099_v8  ;;  %912 = vmatpush3.msk.msra.mxu1 %vm266_vm13, %v1099_v8  ;;  %vm410_vm12 = vcmp.eq.s32.totalorder %v1274_v17, %v1327_v21  ;;  %vm409_vm13 = vcmp.eq.s32.totalorder %v1285_v18, %v1327_v21 }
  0x42   :  { %875 = vmatprep.subr.msk.mxu0 %vm123_vm14, %v1099_v8  ;;  %913 = vmatprep.subr.msk.mxu1 %vm265_vm15, %v1099_v8 }
  0x43   :  { %876 = vmatpush3.msk.msra.mxu0 %vm123_vm14, %v1099_v8  ;;  %914 = vmatpush3.msk.msra.mxu1 %vm265_vm15, %v1099_v8  ;;  %vm408_vm14 = vcmp.eq.s32.totalorder %v1296_v19, %v1327_v21  ;;  %vm407_vm15 = vcmp.eq.s32.totalorder %v1145_v1, %v1327_v21 }
  0x44   :  { %878 = vmatmul.mubr.f32.vlgmr.msra.gmra.mxu0 %v172_v23  ;;  %916 = vmatmul.mubr.f32.vlgmr.msra.gmra.mxu1 %v1335_v24 }
  0x45   :  { %921 = vmatprep.subr.msk.mxu0 %vm422_vm0, %v1099_v8  ;;  %959 = vmatprep.subr.msk.mxu1 %vm422_vm0, %v1099_v8 }
  0x46   :  { %922 = vmatpush3.msk.msra.mxu0 %vm422_vm0, %v1099_v8  ;;  %975 = vmatpush3.msk.msra.mxu1 %vm422_vm0, %v1099_v8  ;;  %vm546_vm0 = vcmp.lt.s32.totalorder %v543_v43, 16 }
  0x47   :  { %923 = vmatprep.subr.msk.mxu0 %vm421_vm1, %v1099_v8  ;;  %960 = vmatprep.subr.msk.mxu1 %vm421_vm1, %v1099_v8  ;;  %v784_v63 = vsel %vm546_vm0, 1.0, %v1100_v62 }
  0x48   :  { %924 = vmatpush3.msk.msra.mxu0 %vm421_vm1, %v1099_v8  ;;  %976 = vmatpush3.msk.msra.mxu1 %vm421_vm1, %v1099_v8 }
  0x49   :  { %925 = vmatprep.subr.msk.mxu0 %vm420_vm2, %v1099_v8  ;;  %961 = vmatprep.subr.msk.mxu1 %vm420_vm2, %v1099_v8 }
  0x4a   :  { %926 = vmatpush3.msk.msra.mxu0 %vm420_vm2, %v1099_v8  ;;  %977 = vmatpush3.msk.msra.mxu1 %vm420_vm2, %v1099_v8  ;;  %vm604_vm2 = vcmask 1040384  }
  0x4b   :  { %927 = vmatprep.subr.msk.mxu0 %vm419_vm3, %v1099_v8  ;;  %962 = vmatprep.subr.msk.mxu1 %vm419_vm3, %v1099_v8 }
  0x4c   :  { %928 = vmatpush3.msk.msra.mxu0 %vm419_vm3, %v1099_v8  ;;  %978 = vmatpush3.msk.msra.mxu1 %vm419_vm3, %v1099_v8  ;;  %vm98_vm3 = vcmask 0  }
  0x4d   :  { %929 = vmatprep.subr.msk.mxu0 %vm418_vm4, %v1099_v8  ;;  %963 = vmatprep.subr.msk.mxu1 %vm418_vm4, %v1099_v8  ;;  %99 = vst.msk [vmem:[#allocation2] sm:$0x1] %vm98_vm3, %v1100_v62  ;;  %100 = vst.msk [vmem:[#allocation3] sm:$0x1] %vm98_vm3, %v1100_v62 }
  0x4e   :  { %930 = vmatpush3.msk.msra.mxu0 %vm418_vm4, %v1099_v8  ;;  %979 = vmatpush3.msk.msra.mxu1 %vm418_vm4, %v1099_v8 }
  0x4f   :  { %931 = vmatprep.subr.msk.mxu0 %vm417_vm5, %v1099_v8  ;;  %964 = vmatprep.subr.msk.mxu1 %vm417_vm5, %v1099_v8 }
  0x50   :  { %932 = vmatpush3.msk.msra.mxu0 %vm417_vm5, %v1099_v8  ;;  %980 = vmatpush3.msk.msra.mxu1 %vm417_vm5, %v1099_v8 }
  0x51   :  { %933 = vmatprep.subr.msk.mxu0 %vm416_vm6, %v1099_v8  ;;  %965 = vmatprep.subr.msk.mxu1 %vm416_vm6, %v1099_v8 }
  0x52   :  { %934 = vmatpush3.msk.msra.mxu0 %vm416_vm6, %v1099_v8  ;;  %981 = vmatpush3.msk.msra.mxu1 %vm416_vm6, %v1099_v8 }
  0x53   :  { %935 = vmatprep.subr.msk.mxu0 %vm415_vm7, %v1099_v8  ;;  %966 = vmatprep.subr.msk.mxu1 %vm415_vm7, %v1099_v8 }
  0x54   :  { %936 = vmatpush3.msk.msra.mxu0 %vm415_vm7, %v1099_v8  ;;  %982 = vmatpush3.msk.msra.mxu1 %vm415_vm7, %v1099_v8 }
  0x55   :  { %937 = vmatprep.subr.msk.mxu0 %vm414_vm8, %v1099_v8  ;;  %967 = vmatprep.subr.msk.mxu1 %vm414_vm8, %v1099_v8 }
  0x56   :  { %938 = vmatpush3.msk.msra.mxu0 %vm414_vm8, %v1099_v8  ;;  %983 = vmatpush3.msk.msra.mxu1 %vm414_vm8, %v1099_v8 }
  0x57   :  { %939 = vmatprep.subr.msk.mxu0 %vm413_vm9, %v1099_v8  ;;  %968 = vmatprep.subr.msk.mxu1 %vm413_vm9, %v1099_v8 }
  0x58   :  { %940 = vmatpush3.msk.msra.mxu0 %vm413_vm9, %v1099_v8  ;;  %984 = vmatpush3.msk.msra.mxu1 %vm413_vm9, %v1099_v8 }
  0x59   :  { %941 = vmatprep.subr.msk.mxu0 %vm412_vm10, %v1099_v8  ;;  %969 = vmatprep.subr.msk.mxu1 %vm412_vm10, %v1099_v8 }
  0x5a   :  { %942 = vmatpush3.msk.msra.mxu0 %vm412_vm10, %v1099_v8  ;;  %985 = vmatpush3.msk.msra.mxu1 %vm412_vm10, %v1099_v8 }
  0x5b   :  { %943 = vmatprep.subr.msk.mxu0 %vm411_vm11, %v1099_v8  ;;  %970 = vmatprep.subr.msk.mxu1 %vm411_vm11, %v1099_v8 }
  0x5c   :  { %944 = vmatpush3.msk.msra.mxu0 %vm411_vm11, %v1099_v8  ;;  %986 = vmatpush3.msk.msra.mxu1 %vm411_vm11, %v1099_v8 }
  0x5d   :  { %945 = vmatprep.subr.msk.mxu0 %vm410_vm12, %v1099_v8  ;;  %971 = vmatprep.subr.msk.mxu1 %vm410_vm12, %v1099_v8 }
  0x5e   :  { %880 = vmatprep.mubr.f32.mxu0 %v173_v25  ;;  %918 = vmatprep.mubr.f32.mxu1 %v315_v26 }
  0x5f   :  { %946 = vmatpush3.msk.msra.mxu0 %vm410_vm12, %v1099_v8  ;;  %987 = vmatpush3.msk.msra.mxu1 %vm410_vm12, %v1099_v8 }
  0x60   :  { %881 = vmatmul.mubr.f32.gmra.mxu0 %v174_v27  ;;  %919 = vmatmul.mubr.f32.gmra.mxu1 %v316_v28 }
  0x61   :  { %947 = vmatprep.subr.msk.mxu0 %vm409_vm13, %v1099_v8  ;;  %972 = vmatprep.subr.msk.mxu1 %vm409_vm13, %v1099_v8 }
  0x62   :  { %948 = vmatpush3.msk.msra.mxu0 %vm409_vm13, %v1099_v8  ;;  %988 = vmatpush3.msk.msra.mxu1 %vm409_vm13, %v1099_v8 }
  0x63   :  { %949 = vmatprep.subr.msk.mxu0 %vm408_vm14, %v1099_v8  ;;  %973 = vmatprep.subr.msk.mxu1 %vm408_vm14, %v1099_v8 }
  0x64   :  { %950 = vmatpush3.msk.msra.mxu0 %vm408_vm14, %v1099_v8  ;;  %989 = vmatpush3.msk.msra.mxu1 %vm408_vm14, %v1099_v8 }
  0x65   :  { %951 = vmatprep.subr.msk.mxu0 %vm407_vm15, %v1099_v8  ;;  %974 = vmatprep.subr.msk.mxu1 %vm407_vm15, %v1099_v8 }
  0x66   :  { %952 = vmatpush3.msk.msra.mxu0 %vm407_vm15, %v1099_v8  ;;  %990 = vmatpush3.msk.msra.mxu1 %vm407_vm15, %v1099_v8 }
  0x67   :  { %953 = vmatprep.mubr.f32.mxu0 %v1331_v22  ;;  %956 = vmatprep.mubr.f32.mxu1 %v315_v26 }
  0x68   :  { %954 = vmatmul.mubr.f32.vlgmr.msra.gmra.mxu0 %v1335_v24  ;;  %957 = vmatmul.mubr.f32.vlgmr.msra.gmra.mxu1 %v316_v28 }
 0x104   :  { %v879_v29 = vpop.f32.mrf.mxu0  ;;  %v917_v30 = vpop.f32.mrf.mxu1 }
 0x105   :  { %v583_v31 = vmul.f32 %v879_v29, %v879_v29  ;;  %v587_v32 = vmul.f32 %v917_v30, %v917_v30 }
 0x106   :  { %v241_v34 = vpop.f32.mrf.mxu0  ;;  %v383_v35 = vpop.f32.mrf.mxu1 }
 0x107   :  { %v591_v33 = vadd.f32 %v587_v32, %v583_v31  ;;  %v582_v44 = vmul.f32 %v241_v34, %v241_v34  ;;  %v586_v45 = vmul.f32 %v383_v35, %v383_v35 }
 0x109   :  { %v590_v54 = vadd.f32 %v586_v45, %v582_v44 }
 0x120   :  { %v882_v36 = vpop.f32.mrf.mxu0  ;;  %v920_v37 = vpop.f32.mrf.mxu1 }
 0x121   :  { %v585_v38 = vmul.f32 %v882_v36, %v882_v36  ;;  %v589_v39 = vmul.f32 %v920_v37, %v920_v37 }
 0x122   :  { %v251_v41 = vpop.f32.mrf.mxu0  ;;  %v393_v42 = vpop.f32.mrf.mxu1 }
 0x123   :  { %v593_v40 = vadd.f32 %v589_v39, %v585_v38  ;;  %v584_v46 = vmul.f32 %v251_v41, %v251_v41  ;;  %v588_v47 = vmul.f32 %v393_v42, %v393_v42 }
 0x125   :  { %v592_v55 = vadd.f32 %v588_v47, %v584_v46 }
 0x128   :  { %v955_v48 = vpop.f32.mrf.mxu0  ;;  %v958_v49 = vpop.f32.mrf.mxu1 }
 0x129   :  { %v595_v50 = vmul.f32 %v955_v48, %v955_v48  ;;  %v550_v51 = vsub.f32 %v917_v30, %v955_v48  ;;  %v597_v57 = vmul.f32 %v958_v49, %v958_v49  ;;  %v552_v0 = vsub.f32 %v920_v37, %v958_v49 }
 0x12a   :  { %v521_v52 = vpop.f32.mrf.mxu0  ;;  %v531_v53 = vpop.f32.mrf.mxu1 }
 0x12b   :  { %v599_v56 = vadd.f32 %v595_v50, %v591_v33  ;;  %v549_v58 = vsub.f32 %v383_v35, %v521_v52  ;;  %v594_v59 = vmul.f32 %v521_v52, %v521_v52  ;;  %v551_v60 = vsub.f32 %v393_v42, %v531_v53 }
 0x12c   :  { %v596_v61 = vmul.f32 %v531_v53, %v531_v53  ;;  %v554_v1 = vmul.f32 %v879_v29, %v550_v51  ;;  %v601_v5 = vadd.f32 %v597_v57, %v593_v40  ;;  %v556_v10 = vmul.f32 %v882_v36, %v552_v0 }
 0x12d   :  { %v553_v2 = vmul.f32 %v549_v58, %v241_v34  ;;  %v598_v3 = vadd.f32 %v594_v59, %v590_v54  ;;  %v621_v6 = vmul.f32 %v784_v63, %v599_v56  ;;  %v555_v9 = vmul.f32 %v551_v60, %v251_v41  ;;  %v619_v58 = vld [vmem:[#allocation3] sm:$0x1] }
 0x12e   :  { %v600_v4 = vadd.f32 %v596_v61, %v592_v55  ;;  %v623_v15 = vmul.f32 %v784_v63, %v601_v5  ;;  %v602_v55 = vld [vmem:[#allocation2] sm:$0x1] }
 0x12f   :  { %v557_v7 = vadd.f32 %v554_v1, %v553_v2  ;;  %v620_v8 = vmul.f32 %v784_v63, %v598_v3 }
 0x130   :  { %v622_v12 = vmul.f32 %v784_v63, %v600_v4 }
 0x131   :  { %v558_v11 = vadd.f32 %v557_v7, %v555_v9  ;;  %v624_v13 = vadd.f32 %v621_v6, %v620_v8 }
 0x133   :  { %v559_v14 = vadd.f32 %v558_v11, %v556_v10  ;;  %v625_v16 = vadd.f32 %v624_v13, %v622_v12 }
 0x135   :  { %v560_v17 = vrot.slane %v559_v14, 4  ;;  %v626_v18 = vadd.f32 %v625_v16, %v623_v15 }
 0x137   :  { %v561_v19 = vadd.f32 %v560_v17, %v559_v14 }
 0x139   :  { %v562_v20 = vrot.slane %v561_v19, 2 }
 0x13b   :  { %v563_v21 = vadd.f32 %v562_v20, %v561_v19 }
 0x13d   :  { %v564_v22 = vrot.slane %v563_v21, 1 }
 0x13f   :  { %v565_v23 = vadd.f32 %v564_v22, %v563_v21 }
 0x141   :  { %v568_v24 = vand.u32 2147483647, %v565_v23  ;;  %v566_v31 = vsub.f32 0.0, %v565_v23 }
 0x143   :  { %v569_v25 = vsub.f32 0.0, %v568_v24  ;;  %v567_v36 = vmax.f32 %v566_v31, 0.0 }
 0x145   :  { %v570_v26 = vmul.f32 1.442695, %v569_v25 }
 0x147   :  { %1003 = vpow2.f32 %v570_v26 }
 0x154   :  { %v1004_v27 = vpop.eup %1003 }
 0x155   :  { %v572_v28 = vadd.f32 1.0, %v1004_v27  ;;  %v575_v29 = vmul.f32 -0.5, %v1004_v27  ;;  %v578_v32 = vand.u32 2147483647, %v1004_v27 }
 0x157   :  { %1005 = vlog2.f32 %v572_v28  ;;  %v576_v30 = vadd.f32 1.0, %v575_v29  ;;  %vm579_vm1 = vcmp.lt.f32.partialorder %v578_v32, 0.0004427343 }
 0x159   :  { %v577_v35 = vmul.f32 %v1004_v27, %v576_v30 }
 0x164   :  { %v1006_v33 = vpop.eup %1005 }
 0x165   :  { %v574_v34 = vmul.f32 0.6931472, %v1006_v33 }
 0x167   :  { %v580_v37 = vsel %vm579_vm1, %v577_v35, %v574_v34 }
 0x168   :  { %v581_v38 = vadd.f32 %v580_v37, %v567_v36 }
 0x16a   :  { %v603_v39 = vmul.f32 %v784_v63, %v581_v38 }
 0x16c   :  { %v605_v40 = vsel %vm604_vm2, %v603_v39, 0.0 }
 0x16d   :  { %606 = vadd.xlane.f32.xlu0 %v605_v40 }
 0x171   :  { %627 = vadd.xlane.f32.xlu0 %v626_v18 }
 0x1f6   :  { %v607_v41 = vpop.xlane.xlu0 %606 }
 0x1f7   :  { %v608_v42 = vrot.slane %v607_v41, 4 }
 0x1f9   :  { %v609_v43 = vadd.f32 %v608_v42, %v607_v41 }
 0x1fa   :  { %v628_v44 = vpop.xlane.xlu0 %627 }
 0x1fb   :  { %v610_v45 = vrot.slane %v609_v43, 2  ;;  %v629_v46 = vrot.slane %v628_v44, 4 }
 0x1fd   :  { %v630_v47 = vadd.f32 %v629_v46, %v628_v44  ;;  %v611_v48 = vadd.f32 %v610_v45, %v609_v43 }
 0x1ff   :  { %v631_v49 = vrot.slane %v630_v47, 2  ;;  %v612_v50 = vrot.slane %v611_v48, 1 }
 0x201   :  { %v632_v51 = vadd.f32 %v631_v49, %v630_v47  ;;  %v613_v52 = vadd.f32 %v612_v50, %v611_v48 }
 0x203   :  { %991 = vpush %v613_v52  ;;  %v633_v53 = vrot.slane %v632_v51, 1 }
 0x205   :  { %v634_v54 = vadd.f32 %v633_v53, %v632_v51 }
 0x207   :  { %993 = vpush %v634_v54 }
 0x234   :  { %s992_s4 = spop %991 }
 0x235   :  { %v615_v56 = vstv %s992_s4 }
 0x236   :  { %v616_v57 = vadd.f32 %v615_v56, %v602_v55 }
 0x238   :  { %618 = vst.msk [vmem:[#allocation2] sm:$0x1] %vm98_vm3, %v616_v57  ;;  %s994_s11 = spop %993 }
 0x239   :  { %v636_v59 = vstv %s994_s11 }
 0x23a   :  { %v637_v60 = vadd.f32 %v636_v59, %v619_v58 }
 0x23c   :  { %638 = vst.msk [vmem:[#allocation3] sm:$0x1] %vm98_vm3, %v637_v60 }
 0x23f   :  { %v642_v61 = vld [vmem:[#allocation2] sm:$0x1] }
 0x240   :  { %643 = vst.msk [vmem:[#allocation9] sm:$0x1] %vm98_vm3, %v642_v61 }
 0x241   :  { %1058 = shalt.err (!%p1055_p0)
}
 0x242   :  { %655 = dma.vmem_to_hbm [thread:$0]  %s653_s13, 16, %s1457_s5, [#allocation6]  }
 0x243   :  { %v644_v62 = vld [vmem:[#allocation3] sm:$0x1]  ;;  %s1067_s20 = scalar_lea.vmem %s663_s15, 16  ;;  %s1071_s21 = scalar_lea.vmem %s663_s15, 32 }
 0x244   :  { %645 = vst.msk [vmem:[#allocation10] sm:$0x1] %vm98_vm3, %v644_v62  ;;  %p1068_p1 = scmp.ne.s32.totalorder %s663_s15, %s1067_s20  ;;  %p1072_p2 = scmp.lt.s32.totalorder %s663_s15, %s663_s15 }
 0x245   :  { %p1073_p3 = scmp.lt.s32.totalorder %s1071_s21, %s1067_s20 }
 0x247   :  { %p1074_p4 = por %p1073_p3, %p1072_p2 }
 0x249   :  { %p1075_p5 = pnand %p1074_p4, %p1068_p1 }
 0x24b   :  { %1078 = shalt.err (!%p1075_p5)
}
 0x24c   :  { %665 = dma.vmem_to_hbm [thread:$0]  %s663_s15, 16, %s1458_s6, [#allocation11]  }
 0x24d   :  { %1091 = dma.done.wait [#allocation6], 16  }
 0x24e   :  { %1092 = vsyncadd [#allocation6], 4294967280 }
 0x24f   :  { %1093 = dma.done.wait [#allocation11], 16  }
 0x250   :  { %1094 = vsyncadd [#allocation11], 4294967280 }
 0x251   :  { %672 = vsyncpa [#allocation5], 1 }
 0x252   :  { %673 = vsyncpa [#allocation8], 1 }
 0x253   :  { %674 = vsyncpa [#allocation6], 1 }
 0x254   :  { %675 = vsyncpa [#allocation11], 1 }

</bundles_post_ra>
